<compile_context>
chip_gen: v6e
topology: v6e:2x2x1
jax: 0.10.0
libtpu: 0.0.40
codegen_flags: <defaults>
</compile_context>

<pallas_src>
import functools

import jax
import jax.numpy as jnp
from jax import lax
from jax.experimental import pallas as pl
from jax.experimental.pallas import tpu as pltpu

_LANE = 128


def _round_up(n: int, m: int) -> int:
    return ((n + m - 1) // m) * m


def _cdiv(a: int, b: int) -> int:
    return (a + b - 1) // b


def _sublane_multiple(dtype) -> int:
    # f32 -> 8, bf16/fp16 -> 16, int8/fp8 -> 32 (second-minor tiling multiple).
    return max(8, 32 // jnp.dtype(dtype).itemsize)


def _detect_vmem_capacity_bytes() -> int:
    default = 64 * 1024 * 1024  # v7x per-TensorCore VMEM: the most restrictive case.
    try:
        info = pltpu.get_tpu_info()
    except Exception:
        return default
    for name in ("vmem_capacity_bytes", "vmem_bytes", "vmem_size_bytes"):
        cap = getattr(info, name, None)
        if cap:
            return int(cap)
    return default


def _generation_budgets() -> tuple[int, int]:
    """(double-buffered block budget, scoped-vmem-limit cap) for this TPU generation."""
    cap = _detect_vmem_capacity_bytes()
    if cap >= 100 * 1024 * 1024:                      # v5e / v6e: 128 MiB physical VMEM
        return 48 * 1024 * 1024, 100 * 1024 * 1024
    return 36 * 1024 * 1024, 48 * 1024 * 1024         # v7x: 64 MiB per TensorCore


def _block_row_bytes(in_features: int, out_features: int, itemsize: int) -> int:
    # Per-batch-row VMEM bytes of the x / o / y blocks, lane padding included (the x
    # block's pad-to-128-lanes cost is deliberately charged here).
    lp = lambda n: _round_up(n, _LANE)
    return itemsize * (lp(in_features) + lp((in_features + 1) * out_features) + lp(out_features))


def _choose_batch_tile(batch: int, in_features: int, out_features: int,
                       itemsize: int, sublane: int, tile_budget_bytes: int) -> int:
    per_row_db = 2 * _block_row_bytes(in_features, out_features, itemsize)  # double-buffered
    b_ceil = _round_up(batch, sublane)

    bt = max(sublane, (tile_budget_bytes // per_row_db) // sublane * sublane)
    bt = min(bt, b_ceil)

    steps = _cdiv(b_ceil, bt)
    max_steps = b_ceil // sublane
    # Prefer >= 4 even grid steps when the batch allows it: 2 pipelined steps per
    # TensorCore on v7x megacore; input-prefetch/writeback overlap on 1-TC chips.
    if steps < 4 and max_steps > steps:
        target = min(4, max_steps)
        if target >= 2:
            target -= target % 2
        bt = max(sublane, _round_up(_cdiv(b_ceil, target), sublane))
        steps = _cdiv(b_ceil, bt)
    # An odd multi-step grid leaves v7x's two cores imbalanced; nudge to an even count.
    if steps > 1 and steps % 2 == 1:
        bt_even = max(sublane, _round_up(_cdiv(b_ceil, steps + 1), sublane))
        if _cdiv(b_ceil, bt_even) % 2 == 0:
            bt = bt_even
    return bt


def _inherited_fc_kernel(x_ref, o_ref, y_ref, *, in_features: int, out_features: int):
    i_f = in_features
    o_f = out_features

    # Bias slab o[:, IN*OUT:(IN+1)*OUT] seeds an f32 accumulator (f32 regardless of
    # input dtype, matching the PyTorch reference numerics).
    acc = o_ref[:, i_f * o_f:(i_f + 1) * o_f].astype(jnp.float32)

    if i_f <= 16:
        # Small static contraction: full unroll with all-static lane slices; x is loaded
        # once so every term reuses the resident vreg for its lane broadcast.
        xv = x_ref[...].astype(jnp.float32)
        for n in range(i_f):
            acc = acc + xv[:, n:n + 1] * o_ref[:, n * o_f:(n + 1) * o_f].astype(jnp.float32)
    else:
        # Larger IN: bounded, lightly unrolled loop keeps code size / live ranges small.
        # TODO(synk): 128-lane-aligned term grouping (review suggestion) not implemented;
        # at these shapes the VPU/XLU work is fully hidden under the block DMA.
        def body(n, a):
            xn = x_ref[:, pl.ds(n, 1)].astype(jnp.float32)
            wn = o_ref[:, pl.ds(n * o_f, o_f)].astype(jnp.float32)
            return a + xn * wn

        acc = lax.fori_loop(0, i_f, body, acc, unroll=2)

    # TODO(synk): non-IDENTITY Activation variants are not translated (module default
    # Activation.IDENTITY is a no-op).
    y_ref[...] = acc.astype(y_ref.dtype)


def single_input_inherited_fc(x, o, in_features: int, out_features: int, *,
                              batch_tile: int | None = None):
    """x: [..., IN], o: [..., (IN+1)*OUT] -> [..., OUT]."""
    lead = x.shape[:-1]
    assert x.shape[-1] == in_features
    assert o.shape[:-1] == lead
    assert o.shape[-1] == (in_features + 1) * out_features

    dtype = jnp.promote_types(x.dtype, o.dtype)
    x2 = x.reshape(-1, in_features).astype(dtype)
    o2 = o.reshape(-1, (in_features + 1) * out_features).astype(dtype)
    B = x2.shape[0]

    itemsize = jnp.dtype(dtype).itemsize
    sublane = _sublane_multiple(dtype)
    tile_budget, limit_cap = _generation_budgets()

    if batch_tile is None:
        batch_tile = _choose_batch_tile(B, in_features, out_features, itemsize, sublane, tile_budget)
    batch_tile = max(sublane, _round_up(batch_tile, sublane))

    # Ragged final block: out-of-bounds output rows are masked by Pallas, so no padding copy.
    grid = (_cdiv(B, batch_tile),)

    # Scoped VMEM limit from the actual double-buffered block footprint (+25% headroom),
    # clamped to what this generation can provide.
    footprint = 2 * batch_tile * _block_row_bytes(in_features, out_features, itemsize)
    vmem_limit = min(limit_cap, max(32 * 1024 * 1024, int(footprint * 1.25)))

    flops = 2 * B * in_features * out_features + B * out_features
    bytes_accessed = itemsize * B * (in_features + (in_features + 1) * out_features + out_features)

    kernel = functools.partial(
        _inherited_fc_kernel, in_features=in_features, out_features=out_features
    )

    y = pl.pallas_call(
        kernel,
        out_shape=jax.ShapeDtypeStruct((B, out_features), dtype),
        grid_spec=pltpu.PrefetchScalarGridSpec(
            num_scalar_prefetch=0,
            grid=grid,
            in_specs=[
                pl.BlockSpec((batch_tile, in_features), lambda b: (b, 0)),
                pl.BlockSpec((batch_tile, (in_features + 1) * out_features), lambda b: (b, 0)),
            ],
            out_specs=pl.BlockSpec((batch_tile, out_features), lambda b: (b, 0)),
        ),
        compiler_params=pltpu.CompilerParams(
            dimension_semantics=("parallel",),
            vmem_limit_bytes=vmem_limit,
        ),
        cost_estimate=pl.CostEstimate(
            flops=flops, transcendentals=0, bytes_accessed=bytes_accessed
        ),
    )(x2, o2)

    return y.reshape(*lead, out_features)


def _reference(x, o, in_features, out_features):
    # Pure-JAX reference mirroring the PyTorch loop.
    y = o[..., in_features * out_features:(in_features + 1) * out_features]
    for n in range(in_features):
        y = y + x[..., n:n + 1] * o[..., n * out_features:(n + 1) * out_features]
    return y


if __name__ == "__main__":
    IN_FEATURES = 4
    OUT_FEATURES = 32

    key = jax.random.PRNGKey(0)
    k1, k2, k3, k4 = jax.random.split(key, 4)

    # Case 1: plain 2-D batch (tile chooser splits it into an even number of grid steps).
    BATCH = 16
    x1 = jax.random.normal(k1, (BATCH, IN_FEATURES), dtype=jnp.float32)
    o1 = jax.random.normal(k2, (BATCH, (IN_FEATURES + 1) * OUT_FEATURES), dtype=jnp.float32)
    y1 = jax.block_until_ready(single_input_inherited_fc(x1, o1, IN_FEATURES, OUT_FEATURES))
    assert y1.shape == (BATCH, OUT_FEATURES)
    assert jnp.allclose(y1, _reference(x1, o1, IN_FEATURES, OUT_FEATURES), atol=1e-5, rtol=1e-5)

    # Case 2: extra leading dim + ragged flattened batch (exercises the un-padded cdiv
    # grid with a masked final block -- no jnp.pad copy, no output slice).
    x2 = jax.random.normal(k3, (2, 11, IN_FEATURES), dtype=jnp.float32)
    o2 = jax.random.normal(k4, (2, 11, (IN_FEATURES + 1) * OUT_FEATURES), dtype=jnp.float32)
    y2 = jax.block_until_ready(single_input_inherited_fc(x2, o2, IN_FEATURES, OUT_FEATURES))
    assert y2.shape == (2, 11, OUT_FEATURES)
    assert jnp.allclose(y2, _reference(x2, o2, IN_FEATURES, OUT_FEATURES), atol=1e-5, rtol=1e-5)

    print("KERNEL_OK")
</pallas_src>

<mosaic_0001>
module attributes {stable_mosaic.version = 11 : i64} {
  func.func @_inherited_fc_kernel(%arg0: i32, %arg1: memref<8x4xf32, #tpu.memory_space<vmem>>, %arg2: memref<8x160xf32, #tpu.memory_space<vmem>>, %arg3: memref<8x32xf32, #tpu.memory_space<vmem>>) attributes {dimension_semantics = [#tpu.dimension_semantics<parallel>], iteration_bounds = array<i64: 2>, scalar_prefetch = 0 : i64, scratch_operands = 0 : i64, tpu.core_type = #tpu.core_type<tc>, window_params = [{transform_indices = @transform_0, window_bounds = array<i64: 8, 4>}, {transform_indices = @transform_1, window_bounds = array<i64: 8, 160>}, {transform_indices = @transform_2, window_bounds = array<i64: 8, 32>}]} {
    %c0 = arith.constant 0 : index
    %c128 = arith.constant 128 : index
    %0 = vector.load %arg2[%c0, %c128] : memref<8x160xf32, #tpu.memory_space<vmem>>, vector<8x32xf32>
    %c0_0 = arith.constant 0 : index
    %c0_1 = arith.constant 0 : index
    %1 = vector.load %arg1[%c0_0, %c0_1] : memref<8x4xf32, #tpu.memory_space<vmem>>, vector<8x4xf32>
    %2 = vector.extract_strided_slice %1 {offsets = [0, 0], sizes = [8, 1], strides = [1, 1]} : vector<8x4xf32> to vector<8x1xf32>
    %c0_2 = arith.constant 0 : index
    %c0_3 = arith.constant 0 : index
    %3 = vector.load %arg2[%c0_2, %c0_3] : memref<8x160xf32, #tpu.memory_space<vmem>>, vector<8x32xf32>
    %4 = vector.broadcast %2 : vector<8x1xf32> to vector<8x32xf32>
    %5 = arith.mulf %4, %3 : vector<8x32xf32>
    %6 = arith.addf %0, %5 : vector<8x32xf32>
    %7 = vector.extract_strided_slice %1 {offsets = [0, 1], sizes = [8, 1], strides = [1, 1]} : vector<8x4xf32> to vector<8x1xf32>
    %c0_4 = arith.constant 0 : index
    %c32 = arith.constant 32 : index
    %8 = vector.load %arg2[%c0_4, %c32] : memref<8x160xf32, #tpu.memory_space<vmem>>, vector<8x32xf32>
    %9 = vector.broadcast %7 : vector<8x1xf32> to vector<8x32xf32>
    %10 = arith.mulf %9, %8 : vector<8x32xf32>
    %11 = arith.addf %6, %10 : vector<8x32xf32>
    %12 = vector.extract_strided_slice %1 {offsets = [0, 2], sizes = [8, 1], strides = [1, 1]} : vector<8x4xf32> to vector<8x1xf32>
    %c0_5 = arith.constant 0 : index
    %c64 = arith.constant 64 : index
    %13 = vector.load %arg2[%c0_5, %c64] : memref<8x160xf32, #tpu.memory_space<vmem>>, vector<8x32xf32>
    %14 = vector.broadcast %12 : vector<8x1xf32> to vector<8x32xf32>
    %15 = arith.mulf %14, %13 : vector<8x32xf32>
    %16 = arith.addf %11, %15 : vector<8x32xf32>
    %17 = vector.extract_strided_slice %1 {offsets = [0, 3], sizes = [8, 1], strides = [1, 1]} : vector<8x4xf32> to vector<8x1xf32>
    %c0_6 = arith.constant 0 : index
    %c96 = arith.constant 96 : index
    %18 = vector.load %arg2[%c0_6, %c96] : memref<8x160xf32, #tpu.memory_space<vmem>>, vector<8x32xf32>
    %19 = vector.broadcast %17 : vector<8x1xf32> to vector<8x32xf32>
    %20 = arith.mulf %19, %18 : vector<8x32xf32>
    %21 = arith.addf %16, %20 : vector<8x32xf32>
    %c0_7 = arith.constant 0 : index
    %c0_8 = arith.constant 0 : index
    %22 = vector.load %arg3[%c0_7, %c0_8] : memref<8x32xf32, #tpu.memory_space<vmem>>, vector<8x32xf32>
    tpu.vector_store %arg3[%c0_7, %c0_8], %21 {strides = array<i32>} : memref<8x32xf32, #tpu.memory_space<vmem>>, vector<8x32xf32>,
    return
  }
  func.func @transform_0(%arg0: i32) -> (i32, i32) {
    %c0_i32 = arith.constant 0 : i32
    %c0_i32_0 = arith.constant 0 : i32
    return %arg0, %c0_i32 : i32, i32
  }
  func.func @transform_1(%arg0: i32) -> (i32, i32) {
    %c0_i32 = arith.constant 0 : i32
    %c0_i32_0 = arith.constant 0 : i32
    return %arg0, %c0_i32 : i32, i32
  }
  func.func @transform_2(%arg0: i32) -> (i32, i32) {
    %c0_i32 = arith.constant 0 : i32
    %c0_i32_0 = arith.constant 0 : i32
    return %arg0, %c0_i32 : i32, i32
  }
}

</mosaic_0001>

<bundles_post_ra>
// kernel: tpu_custom_call.1
= control target key start
LH: loop header
LB: loop body
LE: loop exit
PB: predicated region body
PF: predicated region fallthrough
CT: control target
= control target key end

     0   :  { %7 = vsyncpa [#allocation3], 0  ;;  %s657_s0 = inlined_call_operand.vmem [shape: f32[16,4], index: 0, kind: input, shape index: {}]   ;;  %s658_s1 = inlined_call_operand.hbm [shape: f32[16,160], index: 1, kind: input, shape index: {}]   ;;  %s659_s2 = inlined_call_operand.hbm [shape: f32[16,32], index: 2, kind: output, shape index: {}]  }
   0x1   :  { %9 = vsyncpa [#allocation3 + $0x1], 0 }
   0x2   :  { %10 = vsyncpa [#allocation4], 0 }
   0x3   :  { %12 = vsyncpa [#allocation4 + $0x1], 0  ;;  %s506_s9 = smov 0   ;;  %s508_s10 = smov 0  }
   0x4   :  { %s510_s11 = smov 0   ;;  %s512_s12 = smov 0  }
   0x5 LB: > { %s527_s13 = sadd.s32 4294967295, %s480_s12   ;;  %s315_s14 = sadd.s32 4294967294, %s480_s12   ;;  %s480_s12 = sphi %s512_s12, %s676_s12   ;;  %s476_s11 = sphi %s510_s11, %s675_s11   ;;  %s472_s10 = sphi %s508_s10, %s674_s10   ;;  %s468_s9 = sphi %s506_s9, %s673_s9  }
   0x6   : > { %s531_s15 = sadd.s32 1, %s480_s12   ;;  %s51_s16 = sadd.s32 1, %s476_s11 }
   0x7   : > { %s48_s17 = ssub.s32 %s480_s12, %s531_s15  ;;  %p58_p0 = scmp.ne.s32.totalorder %s476_s11, %s472_s10 }
   0x8   : > { %p49_p1 = scmp.eq.s32.totalorder %s48_s17, 0  ;;  %p59_p2 = scmp.eq.s32.totalorder %s480_s12, 0 }
   0x9   : > { %p64_p3 = scmp.ne.s32.totalorder %s472_s10, %s468_s9  ;;  %p65_p4 = scmp.eq.s32.totalorder %s527_s13, 0 }
   0xa   : > { %s543_s18 = scalar_select %p49_p1, %s476_s11, %s51_s16  }
   0xb   : > { %p545_p5 = por %p59_p2, %p58_p0  ;;  %p549_p6 = por %p65_p4, %p64_p3 }
   0xc   : > { %p88_p7 = scmp.eq.s32.totalorder %s527_s13, 1  ;;  %p94_p8 = scmp.eq.s32.totalorder %s315_s14, 1 }
   0xd   : > { %s663_s20 = scalar_select %p549_p6, 1, 0 }
   0xe   : > { %p342_p10 = scmp.lt.s32.totalorder %s480_s12, 2  ;;  %p556_p11 = por %p88_p7, %p58_p0 }
   0xf   : > { %p560_p12 = por %p94_p8, %p64_p3  ;;  %s121_s23 = sand.u32 1, %s476_s11  }
  0x10   : > { %s664_s21 = scalar_select %p556_p11, 1, 0 }
  0x11   : > { %s665_s22 = scalar_select %p560_p12, 1, 0 }
  0x12   : > { %s329_s24 = sshll.u32 %s480_s12, 8  ;;  %s318_s25 = sshll.u32 %s121_s23, 4 }
  0x13   : > { %s569_s28 = scalar_lea.hbm %s658_s1, %s329_s24  ;;  %s125_s29 = scalar_lea.vmem [#allocation2], %s318_s25 }
  0x14   : > { %s133_s30 = sshll.u32 %s125_s29, 4  ;;  %p573_p13 = pnand %p342_p10, %p545_p5  ;;  %s577_s30 = int_to_ptr.vmem [resolvable:$true] %s133_s30 }
  0x15   : > { %s122_s4 = scalar_lea.sflag [#allocation3], %s121_s23  ;;  %s388_s5 = scalar_lea.hbm %s569_s28, 256 }
  0x16   : > { %p389_p2 = scmp.ne.s32.totalorder %s569_s28, %s388_s5  ;;  %p390_p3 = pneg %p573_p13 }
  0x17   : > { %s393_s8 = scalar_lea.hbm %s658_s1, 512  ;;  %p394_p5 = scmp.lt.s32.totalorder %s569_s28, %s658_s1 }
  0x18   : > { %p391_p4 = pnand %p390_p3, %p389_p2  ;;  %p395_p8 = scmp.lt.s32.totalorder %s393_s8, %s388_s5 }
  0x1a   : > { %p392_p7 = pneg %p391_p4  ;;  %p396_p10 = por %p395_p8, %p394_p5 }
  0x1c   : > { %p397_p9 = pnand %p396_p10, %p392_p7 }
  0x1e   : > { %400 = shalt.err (!%p397_p9)
}
  0x1f   : > { %s401_s17 = scalar_lea.vmem %s577_s30, 256  ;;  %s482_s19 = smov [#allocation2]  }
  0x20   : > { %p402_p0 = scmp.ne.s32.totalorder %s577_s30, %s401_s17  ;;  %s406_s23 = sshll.u32 %s482_s19, 4  ;;  %s407_s23 = int_to_ptr.vmem [resolvable:$false] %s406_s23 }
  0x21   : > { %s408_s24 = scalar_lea.vmem %s407_s23, 512  ;;  %p409_p4 = scmp.lt.s32.totalorder %s577_s30, %s407_s23 }
  0x22   : > { %p404_p1 = pnand %p402_p0, %p390_p3  ;;  %p410_p12 = scmp.lt.s32.totalorder %s408_s24, %s401_s17 }
  0x24   : > { %p405_p2 = pneg %p404_p1  ;;  %p411_p11 = por %p410_p12, %p409_p4 }
  0x26   : > { %p412_p6 = pnand %p411_p11, %p405_p2 }
  0x28   : > { %415 = shalt.err (!%p412_p6)
}
  0x29   : > { %337 = dma.hbm_to_vmem [thread:$0]  (!%p573_p13), %s569_s28, 256, %s577_s30, %s122_s4  }
  0x2a   : > { %p667_p9 = scmp.lt.s32.totalorder %s480_s12, 3  ;;  %p668_p7 = scmp.ge.s32.totalorder %s480_s12, 1 }
  0x2c   : > { %p139_p0 = pnand %p668_p7, %p667_p9 }
  0x2d   : > { %s604_s25 = sand.u32 (!%p139_p0), 1, %s472_s10   ;;  %p669_p6 = scmp.ne.s32.totalorder (!%p139_p0), %s663_s20, 0 }
  0x2e   : > { %142 = sbr.rel (%p139_p0) target bundleno = 322 (0x142), region = 28  ;;  %s322_s26 = sshll.u32 (!%p139_p0), %s604_s25, 4 }
  0x2f   : > { %s145_s27 = scalar_lea.sflag (!%p139_p0), [#allocation3], %s604_s25  ;;  %s608_s29 = scalar_lea.vmem (!%p139_p0), [#allocation2], %s322_s26 }
  0x33   : > { %459 = dma.done.wait (%p669_p6), %s145_s27, 256  }
  0x34   : > { %461 = vsyncadd (%p669_p6), %s145_s27, 4294967040  ;;  %p173_p11 = scmp.lt.s32.totalorder %s527_s13, 1  ;;  %v483_v0 = vmov 1   ;;  %v484_v1 = vmov 3   ;;  %v485_v3 = vmov 2   ;;  %v486_v4 = vmov 0  }
  0x35   : > { %383 = vset.pattern.permute.xlu0 %v483_v0  ;;  %385 = vset.pattern.permute.xlu1 %v484_v1  ;;  %v179_v5 = vld [vmem:[%s608_s29] sm:$0xff]  ;;  %s487_s20 = smov 96   ;;  %s488_s6 = smov 32   ;;  %v177_v14 = vld [vmem:[%s608_s29 + $0x8] sm:$0xff]  ;;  %vm217_vm0 = vcmask 261120  }
  0x36   : > { %s174_s28 = scalar_select %p173_p11, %s527_s13, 1 }
  0x37   : > { %s489_s7 = smov 64   ;;  %s323_s8 = sshll.u32 %s604_s25, 3 }
  0x38   : > { %s324_s30 = sshll.u32 %s174_s28, 3  ;;  %s326_s14 = sshll.u32 %s527_s13, 7 }
  0x39   : > { %s176_s5 = scalar_lea.vmem %s657_s0, %s324_s30  ;;  %s172_s16 = scalar_lea.vmem [#allocation5], %s323_s8 }
  0x3a   : > { %v178_v2 = vld [vmem:[%s176_s5] sm:$0xff]  ;;  %s233_s17 = sshll.u32 %s172_s16, 4  ;;  %s231_s24 = scalar_lea.hbm %s659_s2, %s326_s14  ;;  %s234_s17 = int_to_ptr.vmem [resolvable:$true] %s233_s17 }
  0x3b   : > { %188 = vperm.xlu0 %383, %v178_v2   ;;  %208 = vperm.xlu1 %385, %v178_v2   ;;  %s220_s26 = scalar_lea.sflag [#allocation4], %s604_s25  ;;  %s416_s27 = scalar_lea.vmem %s234_s17, 128 }
  0x3c   : > { %p417_p12 = scmp.ne.s32.totalorder %s234_s17, %s416_s27  ;;  %p670_p13 = scmp.ne.s32.totalorder %s664_s21, 0 }
  0x3d   : > { %s490_s29 = smov [#allocation5]  }
  0x3e   : > { %p418_p1 = pnand %p417_p12, %p670_p13  ;;  %s420_s28 = sshll.u32 %s490_s29, 4  ;;  %s421_s28 = int_to_ptr.vmem [resolvable:$false] %s420_s28 }
  0x3f   : > { %384 = vset.pattern.permute.xlu0 %v485_v3  ;;  %386 = vset.pattern.permute.xlu1 %v486_v4  ;;  %s422_s13 = scalar_lea.vmem %s421_s28, 256  ;;  %p423_p5 = scmp.lt.s32.totalorder %s234_s17, %s421_s28 }
  0x40   : > { %198 = vperm.xlu0 %384, %v178_v2   ;;  %182 = vperm.xlu1 %386, %v178_v2   ;;  %p419_p3 = pneg %p418_p1  ;;  %p424_p8 = scmp.lt.s32.totalorder %s422_s13, %s416_s27 }
  0x42   : > { %p425_p10 = por %p424_p8, %p423_p5 }
  0x44   : > { %387 = vset.pattern.permute.xlu0 %v484_v1  ;;  %p426_p2 = pnand %p425_p10, %p419_p3 }
  0xb6   : > { %v189_v6 = vpop.permute.xlu0 %188  ;;  %v209_v7 = vpop.permute.xlu1 %208 }
  0xb7   : > { %v191_v8 = vmul.f32 %v189_v6, %v179_v5  ;;  %v211_v9 = vmul.f32 %v209_v7, %v179_v5 }
  0xb9   : > { %193 = vrot.lane.b32.xlu1 %v191_v8, %s487_s20 }
  0xbb   : > { %v199_v10 = vpop.permute.xlu0 %198  ;;  %v183_v12 = vpop.permute.xlu1 %182 }
  0xbc   : > { %v201_v11 = vmul.f32 %v199_v10, %v179_v5  ;;  %v185_v13 = vmul.f32 %v183_v12, %v179_v5 }
  0xbd   : > { %213 = vrot.lane.b32.xlu1 %v211_v9, %s488_s6 }
  0xbe   : > { %203 = vrot.lane.b32.xlu0 %v201_v11, %s489_s7  ;;  %v186_v15 = vadd.f32 %v185_v13, %v177_v14 }
 0x12b   : > { %v194_v16 = vpop.permute.xlu1 %193 }
 0x12c   : > { %v196_v17 = vadd.f32 %v194_v16, %v186_v15 }
 0x12f   : > { %v214_v19 = vpop.permute.xlu1 %213 }
 0x130   : > { %v204_v18 = vpop.permute.xlu0 %203 }
 0x131   : > { %v206_v20 = vadd.f32 %v204_v18, %v196_v17 }
 0x133   : > { %v216_v21 = vadd.f32 %v214_v19, %v206_v20 }
 0x135   : > { %218 = vst.msk [vmem:[%s172_s16] sm:$0xff] %vm217_vm0, %v216_v21 }
 0x136   : > { %429 = shalt.err (!%p426_p2)
}
 0x137   : > { %s430_s30 = scalar_lea.hbm %s231_s24, 128  ;;  %s434_s4 = scalar_lea.hbm %s659_s2, 256 }
 0x138   : > { %p431_p4 = scmp.ne.s32.totalorder %s231_s24, %s430_s30  ;;  %p435_p0 = scmp.lt.s32.totalorder %s231_s24, %s659_s2 }
 0x139   : > { %p436_p6 = scmp.lt.s32.totalorder %s434_s4, %s430_s30 }
 0x13a   : > { %p432_p9 = pnand %p431_p4, %p670_p13 }
 0x13b   : > { %p437_p11 = por %p436_p6, %p435_p0 }
 0x13c   : > { %p433_p7 = pneg %p432_p9 }
 0x13e   : > { %p438_p12 = pnand %p437_p11, %p433_p7 }
 0x140   : > { %441 = shalt.err (!%p438_p12)
}
 0x141   : > { %332 = dma.vmem_to_hbm [thread:$0]  (%p670_p13), %s234_s17, 128, %s231_s24, %s220_s26  }
 0x142 PF: > { %s245_s6 = sand.u32 1, %s468_s9   ;;  %p671_p1 = scmp.ne.s32.totalorder %s665_s22, 0 }
 0x143   : > { %p672_p3 = scmp.ge.s32.totalorder %s480_s12, 2  ;;  %s246_s7 = scalar_lea.sflag [#allocation4], %s245_s6 }
 0x145   : > { %p339_p5 = pnand %p672_p3, %p671_p1 }
 0x147   : > { %p340_p8 = pneg %p339_p5 }
 0x149   : > { %463 = dma.done.wait (%p340_p8), %s246_s7, 128  }
 0x14a   : > { %465 = vsyncadd (%p340_p8), %s246_s7, 4294967168  ;;  %p15_p10 = scmp.ge.s32.totalorder %s531_s15, 4   ;;  %s673_s9 = smov %s472_s10 }
 0x14b   : > { %s674_s10 = smov %s476_s11  ;;  %s675_s11 = smov %s543_s18 }
 0x14c   : > { %s676_s12 = smov %s531_s15  ;;  %17 = sbr.rel (!%p15_p10) target bundleno = 5 (0x5), region = 76 }
 0x151   :  { %251 = vsyncpa [#allocation3], 1 }
 0x152   :  { %253 = vsyncpa [#allocation3 + $0x1], 1 }
 0x153   :  { %254 = vsyncpa [#allocation4], 1 }
 0x154   :  { %256 = vsyncpa [#allocation4 + $0x1], 1 }

</bundles_post_ra>
